<compile_context>
chip_gen: v7x
topology: tpu7x:2x2x1
jax: 0.10.0
libtpu: 0.0.40
codegen_flags: <defaults>
</compile_context>

<pallas_src>
import jax
import jax.numpy as jnp
from jax.experimental import pallas as pl
from jax.experimental.pallas import tpu as pltpu


def _round_up(n: int, m: int) -> int:
    return ((n + m - 1) // m) * m


def _lddt_kernel(x_ref, w_ref, b_ref, o_ref):
    # x_ref: (1, TL, F)     -- one sequence tile of one batch element
    # w_ref: (n_bin, F)     -- full projection weight, resident every step
    # b_ref: (n_bin, 1)     -- bias column (broadcasts along lanes)
    # o_ref: (1, n_bin, TL) -- transpose-free output tile, lane-dense along TL
    logits = jax.lax.dot_general(
        w_ref[...], x_ref[0],
        dimension_numbers=(((1,), (1,)), ((), ())),   # contract on F
        preferred_element_type=jnp.float32,
    )                                                 # (n_bin, TL) f32 on the MXU
    o_ref[0] = (logits + b_ref[...]).astype(o_ref.dtype)


def lddt_network_forward(x, weight, bias, *, tile_l=2048, out_dtype=None,
                         use_pallas=None, min_pallas_len=128):
    """LDDTNetwork forward.

    x: (B, L, n_feat); weight: (n_bin, n_feat); bias: (n_bin,) -> (B, n_bin, L).
    out_dtype: optionally emit a narrower output dtype (e.g. jnp.bfloat16) to
    cut output HBM traffic; accumulation stays f32. No wrapper-side input casts
    are performed (they would add an extra HBM pass).
    """
    B, L, F = x.shape
    n_bin = weight.shape[0]
    if out_dtype is None:
        out_dtype = x.dtype

    if use_pallas is None:
        use_pallas = L >= min_pallas_len
    if not use_pallas:
        # Tiny shapes: a fused XLA einsum + transpose beats custom-call overhead.
        logits = jnp.einsum("blf,nf->bln", x, weight) + bias
        return jnp.transpose(logits, (0, 2, 1)).astype(out_dtype)

    # Lane-dense sequence tile: multiple of 128.  Cap at 4096 (v5e 16 MiB scoped
    # VMEM; the (1, tl, 32) f32 x block is 4x lane-padded -> tl*512 B per buffer).
    tl = _round_up(min(tile_l, 4096, _round_up(L, 128)), 128)
    # v7x has 2 TensorCores: make sure the parallel grid has >= 2 steps.
    while B * pl.cdiv(L, tl) < 2 and tl > 256:
        tl = _round_up(tl // 2, 128)

    grid = (B, pl.cdiv(L, tl))
    bias_col = bias.astype(jnp.float32).reshape(n_bin, 1)

    cost = pl.CostEstimate(
        flops=2 * B * L * F * n_bin,
        transcendentals=0,
        bytes_accessed=(x.size * x.dtype.itemsize
                        + weight.size * weight.dtype.itemsize
                        + bias_col.size * 4
                        + B * n_bin * L * jnp.dtype(out_dtype).itemsize),
    )

    out = pl.pallas_call(
        _lddt_kernel,
        out_shape=jax.ShapeDtypeStruct((B, n_bin, L), out_dtype),
        grid_spec=pl.GridSpec(
            grid=grid,
            in_specs=[
                pl.BlockSpec((1, tl, F), lambda b, l: (b, l, 0)),      # x tile
                pl.BlockSpec((n_bin, F), lambda b, l: (0, 0)),         # weight (resident)
                pl.BlockSpec((n_bin, 1), lambda b, l: (0, 0)),         # bias column
            ],
            out_specs=pl.BlockSpec((1, n_bin, tl), lambda b, l: (b, 0, l)),
        ),
        compiler_params=pltpu.CompilerParams(
            dimension_semantics=("parallel", "parallel")),
        cost_estimate=cost,
    )(x, weight, bias_col)

    return out


if __name__ == "__main__":
    # Shapes consistent with the module: batch=2, seq=8, n_feat=32, n_bin_lddt=50.
    B, L, n_feat, n_bin = 2, 8, 32, 50

    key = jax.random.PRNGKey(0)
    kx, kw, kb = jax.random.split(key, 3)

    x = jax.random.normal(kx, (B, L, n_feat), dtype=jnp.float32)
    # NOTE: the PyTorch module's reset_parameter() zero-inits proj; use
    # deterministic non-zero params so the matmul path is actually exercised.
    weight = jax.random.normal(kw, (n_bin, n_feat), dtype=jnp.float32) * 0.05
    bias = jax.random.normal(kb, (n_bin,), dtype=jnp.float32) * 0.05

    ref_fn = lambda xx: jnp.transpose(
        jnp.einsum("blf,nf->bln", xx, weight) + bias, (0, 2, 1))

    # 1) Force the Pallas path at the small test shape (L=8 -> one masked 128 tile).
    out = jax.block_until_ready(
        lddt_network_forward(x, weight, bias, use_pallas=True))
    assert out.shape == (B, n_bin, L), out.shape
    assert jnp.allclose(out, ref_fn(x), atol=1e-5, rtol=1e-5), "mismatch (small)"

    # 2) Multi-tile case with a ragged last tile (L=300, tl=128) exercising the
    #    (B, L_tiles) parallel grid and store-side masking.
    L2 = 300
    x2 = jax.random.normal(kx, (B, L2, n_feat), dtype=jnp.float32)
    out2 = jax.block_until_ready(
        lddt_network_forward(x2, weight, bias, tile_l=128))
    assert out2.shape == (B, n_bin, L2), out2.shape
    assert jnp.allclose(out2, ref_fn(x2), atol=1e-4, rtol=1e-4), "mismatch (ragged)"

    print("KERNEL_OK")
</pallas_src>

<mosaic_0001>
module attributes {stable_mosaic.version = 11 : i64} {
  func.func @_lddt_kernel(%arg0: i32, %arg1: i32, %arg2: memref<1x128x32xf32, #tpu.memory_space<vmem>>, %arg3: memref<50x32xf32, #tpu.memory_space<vmem>>, %arg4: memref<50x1xf32, #tpu.memory_space<vmem>>, %arg5: memref<1x50x128xf32, #tpu.memory_space<vmem>>) attributes {dimension_semantics = [#tpu.dimension_semantics<parallel>, #tpu.dimension_semantics<parallel>], iteration_bounds = array<i64: 2, 1>, scalar_prefetch = 0 : i64, scratch_operands = 0 : i64, tpu.core_type = #tpu.core_type<tc>, window_params = [{transform_indices = @transform_0, window_bounds = array<i64: 1, 128, 32>}, {pipeline_mode = #tpu.pipeline_mode<synchronous>, transform_indices = @transform_1, window_bounds = array<i64: 50, 32>}, {pipeline_mode = #tpu.pipeline_mode<synchronous>, transform_indices = @transform_2, window_bounds = array<i64: 50, 1>}, {transform_indices = @transform_3, window_bounds = array<i64: 1, 50, 128>}]} {
    %c0 = arith.constant 0 : index
    %c0_0 = arith.constant 0 : index
    %0 = vector.load %arg3[%c0, %c0_0] : memref<50x32xf32, #tpu.memory_space<vmem>>, vector<50x32xf32>
    %c0_1 = arith.constant 0 : index
    %c0_2 = arith.constant 0 : index
    %c0_3 = arith.constant 0 : index
    %1 = vector.load %arg2[%c0_1, %c0_2, %c0_3] : memref<1x128x32xf32, #tpu.memory_space<vmem>>, vector<1x128x32xf32>
    %2 = vector.shape_cast %1 : vector<1x128x32xf32> to vector<128x32xf32>
    %cst = arith.constant dense<0.000000e+00> : vector<50x128xf32>
    %3 = tpu.matmul %0, %2, %cst {dimension_numbers = #tpu.dot_dimension_numbers<[1], [1], [0], [0], [0, 0, 1, 0], [], []>} : vector<50x32xf32>, vector<128x32xf32>, vector<50x128xf32> -> vector<50x128xf32>
    %c0_4 = arith.constant 0 : index
    %c0_5 = arith.constant 0 : index
    %4 = vector.load %arg4[%c0_4, %c0_5] : memref<50x1xf32, #tpu.memory_space<vmem>>, vector<50x1xf32>
    %5 = vector.broadcast %4 : vector<50x1xf32> to vector<50x128xf32>
    %6 = arith.addf %3, %5 : vector<50x128xf32>
    %c0_6 = arith.constant 0 : index
    %c0_7 = arith.constant 0 : index
    %c0_8 = arith.constant 0 : index
    %7 = vector.load %arg5[%c0_6, %c0_7, %c0_8] : memref<1x50x128xf32, #tpu.memory_space<vmem>>, vector<1x50x128xf32>
    %8 = vector.shape_cast %7 : vector<1x50x128xf32> to vector<50x128xf32>
    %9 = vector.shape_cast %6 : vector<50x128xf32> to vector<1x50x128xf32>
    tpu.vector_store %arg5[%c0_6, %c0_7, %c0_8], %9 {strides = array<i32>} : memref<1x50x128xf32, #tpu.memory_space<vmem>>, vector<1x50x128xf32>,
    return
  }
  func.func @transform_0(%arg0: i32, %arg1: i32) -> (i32, i32, i32) {
    %c0_i32 = arith.constant 0 : i32
    %c0_i32_0 = arith.constant 0 : i32
    return %arg0, %arg1, %c0_i32 : i32, i32, i32
  }
  func.func @transform_1(%arg0: i32, %arg1: i32) -> (i32, i32) {
    %c0_i32 = arith.constant 0 : i32
    %c0_i32_0 = arith.constant 0 : i32
    %c0_i32_1 = arith.constant 0 : i32
    return %c0_i32, %c0_i32_0 : i32, i32
  }
  func.func @transform_2(%arg0: i32, %arg1: i32) -> (i32, i32) {
    %c0_i32 = arith.constant 0 : i32
    %c0_i32_0 = arith.constant 0 : i32
    %c0_i32_1 = arith.constant 0 : i32
    return %c0_i32, %c0_i32_0 : i32, i32
  }
  func.func @transform_3(%arg0: i32, %arg1: i32) -> (i32, i32, i32) {
    %c0_i32 = arith.constant 0 : i32
    %c0_i32_0 = arith.constant 0 : i32
    return %arg0, %c0_i32, %arg1 : i32, i32, i32
  }
}

</mosaic_0001>

<bundles_post_ra>
// kernel: tpu_custom_call.1
= control target key start
LH: loop header
LB: loop body
LE: loop exit
PB: predicated region body
PF: predicated region fallthrough
CT: control target
= control target key end

     0   :  { %s771_s12 = smov 0   ;;  %s773_s13 = smov 0   ;;  %s943_s0 = inlined_call_operand.vmem [shape: f32[2,8,32], index: 0, kind: input, shape index: {}]   ;;  %s944_s1 = inlined_call_operand.vmem [shape: f32[50,32], index: 1, kind: input, shape index: {}]   ;;  %s945_s2 = inlined_call_operand.vmem [shape: f32[50,1], index: 2, kind: input, shape index: {}]   ;;  %s946_s3 = inlined_call_operand.vmem [shape: f32[2,50,8], index: 3, kind: output, shape index: {}]  }
   0x1   :  { %s775_s14 = smov 0  }
   0x2 LB: > { %s25_s15 = sadd.s32 1, %s741_s13  ;;  %p540_p0 = scmp.ge.s32.totalorder %s745_s14, 1  ;;  %s745_s14 = sphi %s775_s14, %s13_s14   ;;  %s741_s13 = sphi %s773_s13, %s950_s13   ;;  %s737_s12 = sphi %s771_s12, %s949_s12  }
   0x3   : > { %p27_p1 = scmp.ge.s32.totalorder %s25_s15, 2  ;;  %p161_p2 = scmp.lt.s32.totalorder %s745_s14, 3 }
   0x5   : > { %s952_s15 = smov (%p27_p1, %s25_s15), 0  ;;  %p162_p3 = pnand %p540_p0, %p161_p2 }
   0x6   : > { %p196_p4 = scmp.lt.s32.totalorder (!%p162_p3), %s737_s12, 1  ;;  %v747_v0 = vmov (!%p162_p3), 0.0|0.0   ;;  %vm748_vm0 = vmmov (!%p162_p3), 0   ;;  %v749_v1 = vmov (!%p162_p3), 0.0   ;;  %vm279_vm1 = vcmask (!%p162_p3), 261120   ;;  %v237_v3 = vld [vmem:[%s945_s2] sm:$0xff] (!%p162_p3) }
   0x7   : > { %165 = sbr.rel (%p162_p3) target bundleno = 310 (0x136), region = 32  ;;  %644 = vmatprep.subr.bf16.mxu0 (!%p162_p3), %v747_v0  ;;  %676 = vmatprep.subr.bf16.mxu1 (!%p162_p3), %v747_v0  ;;  %v750_v2 = vmov (!%p162_p3), 0   ;;  %v239_v4 = vld [vmem:[%s945_s2 + $0x10] sm:$0xff] (!%p162_p3)  ;;  %v238_v5 = vld [vmem:[%s945_s2 + $0x8] sm:$0xff] (!%p162_p3)  ;;  %vm816_vm2 = vmpackc.low (!%p162_p3), %vm279_vm1, %vm279_vm1 }
   0x8   : > { %623 = vmatprep.mubr.msk.f32.mxu0 (!%p162_p3), %vm748_vm0, %v749_v1  ;;  %635 = vmatprep.mubr.msk.f32.mxu1 (!%p162_p3), %vm748_vm0, %v749_v1  ;;  %v240_v10 = vld [vmem:[%s945_s2 + $0x18] sm:$0xff] (!%p162_p3)  ;;  %v241_v11 = vld [vmem:[%s945_s2 + $0x20] sm:$0xff] (!%p162_p3)  ;;  %v242_v14 = vld [vmem:[%s945_s2 + $0x28] sm:$0xff] (!%p162_p3) }
   0x9   : > { %721 = vset.pattern.permute.xlu0 (!%p162_p3), %v750_v2  ;;  %722 = vset.pattern.permute.xlu1 (!%p162_p3), %v750_v2  ;;  %v243_v16 = vld [vmem:[%s945_s2 + $0x30] sm:$0x3] (!%p162_p3)  ;;  %v214_v35 = vld [vmem:[%s944_s1] sm:$0xff] (!%p162_p3)  ;;  %v215_v37 = vld [vmem:[%s944_s1 + $0x8] sm:$0xff] (!%p162_p3) }
   0xa   : > { %246 = vperm.xlu0 (!%p162_p3), %721, %v237_v3   ;;  %256 = vperm.xlu1 (!%p162_p3), %722, %v239_v4   ;;  %v218_v36 = vld [vmem:[%s944_s1 + $0x20] sm:$0xff] (!%p162_p3)  ;;  %v219_v38 = vld [vmem:[%s944_s1 + $0x28] sm:$0xff] (!%p162_p3)  ;;  %v216_v39 = vld [vmem:[%s944_s1 + $0x10] sm:$0xff] (!%p162_p3) }
   0xb   : > { %v220_v40 = vld [vmem:[%s944_s1 + $0x30] sm:$0x3] (!%p162_p3)  ;;  %v217_v41 = vld [vmem:[%s944_s1 + $0x18] sm:$0xff] (!%p162_p3) }
   0xe   : > { %s954_s12 = smov (!%p196_p4, %s737_s12), 1  ;;  %251 = vperm.xlu0 %721, %v238_v5   ;;  %261 = vperm.xlu1 %722, %v240_v10  }
   0xf   : > { %s541_s18 = sshll.u32 %s954_s12, 3  ;;  %s692_s25 = smul.u32 56, %s954_s12 }
  0x10   : > { %s807_s23 = scalar_lea.vmem %s943_s0, %s541_s18 }
  0x11   : > { %v221_v6 = vld [vmem:[%s807_s23] sm:$0xff]  ;;  %v222_v7 = vld [vmem:[%s807_s23 + $0x8] sm:$0xff]  ;;  %v223_v12 = vld [vmem:[%s807_s23 + $0x10] sm:$0xff]  ;;  %s213_s28 = scalar_lea.vmem %s946_s3, %s692_s25 }
  0x12   : > { %v645_v9 = vpack.c.bf16 %v222_v7, %v221_v6  ;;  %v224_v13 = vld [vmem:[%s807_s23 + $0x18] sm:$0xff]  ;;  %266 = vperm.xlu0 %721, %v241_v11   ;;  %271 = vperm.xlu1 %722, %v242_v14   ;;  %v225_v17 = vld [vmem:[%s807_s23 + $0x20] sm:$0xff]  ;;  %v226_v18 = vld [vmem:[%s807_s23 + $0x28] sm:$0xff] }
  0x13   : > { %v649_v15 = vpack.c.bf16 %v224_v13, %v223_v12  ;;  %v653_v19 = vpack.c.bf16 %v226_v18, %v225_v17  ;;  %v227_v20 = vld [vmem:[%s807_s23 + $0x30] sm:$0xff]  ;;  %v228_v21 = vld [vmem:[%s807_s23 + $0x38] sm:$0xff]  ;;  %v229_v23 = vld [vmem:[%s807_s23 + $0x40] sm:$0xff] }
  0x14   : > { %647 = vmatpush3.bf16.xpose.msk.msra.mxu0 %vm816_vm2, %v645_v9  ;;  %684 = vmatpush3.bf16.xpose.msk.msra.mxu1 %vm816_vm2, %v645_v9  ;;  %v657_v22 = vpack.c.bf16 %v228_v21, %v227_v20  ;;  %v230_v24 = vld [vmem:[%s807_s23 + $0x48] sm:$0xff]  ;;  %v231_v26 = vld [vmem:[%s807_s23 + $0x50] sm:$0xff]  ;;  %v232_v27 = vld [vmem:[%s807_s23 + $0x58] sm:$0xff] }
  0x15   : > { %648 = vmatprep.subr.bf16.mxu0 %v747_v0  ;;  %677 = vmatprep.subr.bf16.mxu1 %v747_v0  ;;  %v661_v25 = vpack.c.bf16 %v230_v24, %v229_v23  ;;  %v665_v28 = vpack.c.bf16 %v232_v27, %v231_v26  ;;  %v233_v29 = vld [vmem:[%s807_s23 + $0x60] sm:$0xff]  ;;  %v234_v30 = vld [vmem:[%s807_s23 + $0x68] sm:$0xff]  ;;  %v235_v32 = vld [vmem:[%s807_s23 + $0x70] sm:$0xff] }
  0x16   : > { %276 = vperm.xlu0 %721, %v243_v16   ;;  %v669_v31 = vpack.c.bf16 %v234_v30, %v233_v29  ;;  %v236_v33 = vld [vmem:[%s807_s23 + $0x78] sm:$0xff] }
  0x17   : > { %v673_v34 = vpack.c.bf16 %v236_v33, %v235_v32 }
  0x1c   : > { %651 = vmatpush3.bf16.xpose.msk.msra.mxu0 %vm816_vm2, %v649_v15  ;;  %685 = vmatpush3.bf16.xpose.msk.msra.mxu1 %vm816_vm2, %v649_v15 }
  0x1d   : > { %652 = vmatprep.subr.bf16.mxu0 %v747_v0  ;;  %678 = vmatprep.subr.bf16.mxu1 %v747_v0 }
  0x24   : > { %655 = vmatpush3.bf16.xpose.msk.msra.mxu0 %vm816_vm2, %v653_v19  ;;  %686 = vmatpush3.bf16.xpose.msk.msra.mxu1 %vm816_vm2, %v653_v19 }
  0x25   : > { %656 = vmatprep.subr.bf16.mxu0 %v747_v0  ;;  %679 = vmatprep.subr.bf16.mxu1 %v747_v0 }
  0x2c   : > { %659 = vmatpush3.bf16.xpose.msk.msra.mxu0 %vm816_vm2, %v657_v22  ;;  %687 = vmatpush3.bf16.xpose.msk.msra.mxu1 %vm816_vm2, %v657_v22 }
  0x2d   : > { %660 = vmatprep.subr.bf16.mxu0 %v747_v0  ;;  %680 = vmatprep.subr.bf16.mxu1 %v747_v0 }
  0x34   : > { %663 = vmatpush3.bf16.xpose.msk.msra.mxu0 %vm816_vm2, %v661_v25  ;;  %688 = vmatpush3.bf16.xpose.msk.msra.mxu1 %vm816_vm2, %v661_v25 }
  0x35   : > { %664 = vmatprep.subr.bf16.mxu0 %v747_v0  ;;  %681 = vmatprep.subr.bf16.mxu1 %v747_v0 }
  0x3c   : > { %667 = vmatpush3.bf16.xpose.msk.msra.mxu0 %vm816_vm2, %v665_v28  ;;  %689 = vmatpush3.bf16.xpose.msk.msra.mxu1 %vm816_vm2, %v665_v28 }
  0x3d   : > { %668 = vmatprep.subr.bf16.mxu0 %v747_v0  ;;  %682 = vmatprep.subr.bf16.mxu1 %v747_v0 }
  0x44   : > { %671 = vmatpush3.bf16.xpose.msk.msra.mxu0 %vm816_vm2, %v669_v31  ;;  %690 = vmatpush3.bf16.xpose.msk.msra.mxu1 %vm816_vm2, %v669_v31 }
  0x45   : > { %672 = vmatprep.subr.bf16.mxu0 %v747_v0  ;;  %683 = vmatprep.subr.bf16.mxu1 %v747_v0 }
  0x4c   : > { %675 = vmatpush3.bf16.xpose.msk.msra.mxu0 %vm816_vm2, %v673_v34  ;;  %691 = vmatpush3.bf16.xpose.msk.msra.mxu1 %vm816_vm2, %v673_v34 }
  0x53   : > { %624 = vmatmul.mubr.msk.f32.vlgmr.msra.gmra.mrb[0].mxu0 %vm279_vm1, %v214_v35  ;;  %636 = vmatmul.mubr.msk.f32.vlgmr.msra.gmra.mrb[0].mxu1 %vm279_vm1, %v218_v36 }
  0x54   : > { %626 = vmatprep.mubr.msk.f32.mxu0 %vm748_vm0, %v749_v1  ;;  %638 = vmatprep.mubr.msk.f32.mxu1 %vm748_vm0, %v749_v1 }
  0x57   : > { %627 = vmatmul.mubr.msk.f32.gmra.mrb[2].mxu0 %vm279_vm1, %v215_v37  ;;  %639 = vmatmul.mubr.msk.f32.gmra.mrb[2].mxu1 %vm279_vm1, %v219_v38 }
  0x58   : > { %629 = vmatprep.mubr.msk.f32.mxu0 %vm748_vm0, %v749_v1  ;;  %641 = vmatprep.mubr.msk.f32.mxu1 %vm748_vm0, %v749_v1 }
  0x5b   : > { %630 = vmatmul.mubr.msk.f32.gmra.mrb[4].mxu0 %vm279_vm1, %v216_v39  ;;  %642 = vmatmul.mubr.msk.f32.gmra.mrb[4].mxu1 %vm279_vm1, %v220_v40 }
  0x5c   : > { %632 = vmatprep.mubr.msk.f32.mxu0 %vm748_vm0, %v749_v1 }
  0x5f   : > { %633 = vmatmul.mubr.msk.f32.gmra.mrb[6].mxu0 %vm279_vm1, %v217_v41 }
  0x89   : > { %v247_v42 = vpop.permute.xlu0 %246  ;;  %v257_v43 = vpop.permute.xlu1 %256 }
  0x8d   : > { %v252_v44 = vpop.permute.xlu0 %251  ;;  %v262_v45 = vpop.permute.xlu1 %261 }
  0x91   : > { %v267_v46 = vpop.permute.xlu0 %266  ;;  %v272_v53 = vpop.permute.xlu1 %271 }
  0x95   : > { %v277_v60 = vpop.permute.xlu0 %276 }
 0x126   : > { %v415_v47 = vpop.f32.mrb[0].mxu0  ;;  %v435_v48 = vpop.f32.mrb[0].mxu1 }
 0x127   : > { %v416_v49 = vadd.f32 %v415_v47, %v247_v42  ;;  %v436_v50 = vadd.f32 %v435_v48, %v267_v46  ;;  %v625_v51 = vpop.f32.mrb[1].mxu0  ;;  %v637_v52 = vpop.f32.mrb[1].mxu1 }
 0x129   : > { %449 = vst [vmem:[%s213_s28] sm:$0xff] %v416_v49  ;;  %453 = vst [vmem:[%s213_s28 + $0x20] sm:$0xff] %v436_v50 }
 0x12a   : > { %v420_v54 = vpop.f32.mrb[2].mxu0  ;;  %v440_v55 = vpop.f32.mrb[2].mxu1 }
 0x12b   : > { %v421_v56 = vadd.f32 %v420_v54, %v252_v44  ;;  %v441_v57 = vadd.f32 %v440_v55, %v272_v53  ;;  %v628_v58 = vpop.f32.mrb[3].mxu0  ;;  %v640_v59 = vpop.f32.mrb[3].mxu1 }
 0x12d   : > { %450 = vst [vmem:[%s213_s28 + $0x8] sm:$0xff] %v421_v56  ;;  %454 = vst [vmem:[%s213_s28 + $0x28] sm:$0xff] %v441_v57 }
 0x12e   : > { %v425_v61 = vpop.f32.mrb[4].mxu0  ;;  %v445_v62 = vpop.f32.mrb[4].mxu1 }
 0x12f   : > { %v426_v63 = vadd.f32 %v425_v61, %v257_v43  ;;  %v446_v0 = vadd.f32 %v445_v62, %v277_v60  ;;  %v631_v1 = vpop.f32.mrb[5].mxu0  ;;  %v643_v2 = vpop.f32.mrb[5].mxu1 }
 0x131   : > { %451 = vst [vmem:[%s213_s28 + $0x10] sm:$0xff] %v426_v63  ;;  %455 = vst [vmem:[%s213_s28 + $0x30] sm:$0x3] %v446_v0 }
 0x132   : > { %v430_v3 = vpop.f32.mrb[6].mxu0 }
 0x133   : > { %v431_v4 = vadd.f32 %v430_v3, %v262_v45  ;;  %v634_v5 = vpop.f32.mrb[7].mxu0 }
 0x135   : > { %452 = vst [vmem:[%s213_s28 + $0x18] sm:$0xff] %v431_v4 }
 0x136 PF: > { %s13_s14 = sadd.s32 1, %s745_s14   ;;  %s949_s12 = smov %s741_s13 }
 0x137   : > { %p10_p5 = scmp.ge.s32.totalorder %s13_s14, 4   ;;  %s950_s13 = smov %s952_s15 }
 0x139   :  { %12 = sbr.rel (!%p10_p5) target bundleno = 2 (0x2), region = 62 }

</bundles_post_ra>
